<compile_context>
chip_gen: v7x
topology: tpu7x:2x2x1
jax: 0.10.0
libtpu: 0.0.40
codegen_flags: <defaults>
</compile_context>

<pallas_src>
import functools

import jax
import jax.numpy as jnp
from jax.experimental import pallas as pl
from jax.experimental.pallas import tpu as pltpu

_LANE = 128
_SUBLANE = 8


def _round_up(x, m):
    return (x + m - 1) // m * m


# ----------------------------------------------------------------------------
# One-time probe: pin down the rotate direction of pltpu.roll so the in-kernel
# spatial shifts are correct regardless of the installed jax's sign convention.
# ----------------------------------------------------------------------------
_ROLL_IS_NUMPY_LIKE = None


def _roll_is_numpy_like():
    """True iff pltpu.roll(x, s, axis)[..., i] == x[..., (i - s) % n] (np.roll)."""
    global _ROLL_IS_NUMPY_LIKE
    if _ROLL_IS_NUMPY_LIKE is None:
        def probe(x_ref, o_ref):
            o_ref[...] = pltpu.roll(x_ref[...], 1, axis=1)

        x = jnp.broadcast_to(jnp.arange(_LANE, dtype=jnp.float32),
                             (_SUBLANE, _LANE))
        y = pl.pallas_call(
            probe,
            out_shape=jax.ShapeDtypeStruct((_SUBLANE, _LANE), jnp.float32),
        )(x)
        _ROLL_IS_NUMPY_LIKE = bool(float(jax.device_get(y[0, 0])) == float(_LANE - 1))
    return _ROLL_IS_NUMPY_LIKE


# ----------------------------------------------------------------------------
# In-kernel helpers (operate on lane-dense (Cp, N*H*W) f32 values)
# ----------------------------------------------------------------------------
def _shift_flat(x, off, numpy_roll):
    """y[:, m] = x[:, (m + off) mod M] (wrap-around; caller masks invalid)."""
    if off == 0:
        return x
    M = x.shape[1]
    shift = (-off if numpy_roll else off) % M
    return pltpu.roll(x, shift, axis=1)


def _conv3x3_packed(x, w_packed, bias, mask9, W, *, relu, residual=None,
                    numpy_roll):
    """3x3 'same' conv on a lane-flat (Cp, M) map via ONE MXU matmul.

    w_packed : (Cp, 9*Cp)  [out, tap*in], taps in (kh, kw) row-major order,
               BN scale already folded in.
    bias     : (Cp, 1)
    mask9    : (9, M) f32 0/1 — validity of each tap's source pixel.
    """
    pieces = []
    k = 0
    for dh in (-1, 0, 1):
        for dw in (-1, 0, 1):
            s = _shift_flat(x, dh * W + dw, numpy_roll)
            if dh != 0 or dw != 0:
                s = s * mask9[k:k + 1, :]      # sublane-broadcast multiply
            pieces.append(s)
            k += 1
    stacked = jnp.concatenate(pieces, axis=0)                      # (9*Cp, M)
    y = jnp.dot(w_packed, stacked, preferred_element_type=jnp.float32) + bias
    if residual is not None:
        y = y + residual
    if relu:
        y = jnp.maximum(y, 0.0)
    return y


def _hr_module_kernel(x0_ref, x1_ref,
                      wb0_ref, bb0_ref, wb1_ref, bb1_ref,
                      wu_ref, bu_ref, wd_ref, bd_ref,
                      up_ref, sub_ref, mask0_ref, mask1_ref,
                      out0_ref, out1_ref,
                      *, W0, W1, n_blocks, numpy_roll):
    mask0 = mask0_ref[...]
    mask1 = mask1_ref[...]

    def run_branch(x, w_ref, b_ref, mask9, W):
        for blk in range(n_blocks):
            c0, c1 = 2 * blk, 2 * blk + 1
            y = _conv3x3_packed(x, w_ref[c0], b_ref[c0], mask9, W,
                                relu=True, numpy_roll=numpy_roll)
            x = _conv3x3_packed(y, w_ref[c1], b_ref[c1], mask9, W,
                                relu=True, residual=x, numpy_roll=numpy_roll)
        return x

    # --- branches (all BasicBlocks), fully resident in VMEM ------------------
    b0 = run_branch(x0_ref[...], wb0_ref, bb0_ref, mask0, W0)      # (Cp, M0)
    b1 = run_branch(x1_ref[...], wb1_ref, bb1_ref, mask1, W1)      # (Cp, M1)

    # --- fuse output 0: relu(b0 + upsample2x(BN(1x1conv(b1)))) ----------------
    t = jnp.dot(wu_ref[...], b1, preferred_element_type=jnp.float32) + bu_ref[...]
    out0_ref[...] = jnp.maximum(
        b0 + jnp.dot(t, up_ref[...], preferred_element_type=jnp.float32), 0.0)

    # --- fuse output 1: relu(BN(3x3 stride-2 conv(b0)) + b1) ------------------
    # stride-2 conv (pad 1) == stride-1 conv followed by picking even (h, w);
    # the pick is a matmul with the 0/1 selection matrix `sub_ref`.
    full = _conv3x3_packed(b0, wd_ref[...], bd_ref[...], mask0, W0,
                           relu=False, numpy_roll=numpy_roll)       # (Cp, M0)
    down = jnp.dot(full, sub_ref[...], preferred_element_type=jnp.float32)
    out1_ref[...] = jnp.maximum(down + b1, 0.0)


# ----------------------------------------------------------------------------
# Wrapper: layout glue + weight folding/packing + one pallas_call
# ----------------------------------------------------------------------------
def hr_module_forward(xs, params, num_branches, multi_scale_output=True):
    """Pallas-backed HighResolutionModule forward.  xs: list of NHWC tensors."""
    assert num_branches == 2 and multi_scale_output, \
        "fused kernel is specialized to the 2-branch, multi_scale_output config"
    x0, x1 = xs
    N, H0, W0, C0 = x0.shape
    _, H1, W1, C1 = x1.shape
    assert H0 == 2 * H1 and W0 == 2 * W1
    assert len(params["branches"][0]) == len(params["branches"][1])
    n_blocks = len(params["branches"][0])
    Cp = _round_up(max(C0, C1), _SUBLANE)
    M0, M1 = N * H0 * W0, N * H1 * W1
    f32 = jnp.float32

    def to_flat(x, cp):
        c = x.shape[-1]
        f = jnp.transpose(x, (3, 0, 1, 2)).reshape(c, -1)
        return jnp.pad(f, ((0, cp - c), (0, 0))).astype(f32)

    x0f = to_flat(x0, Cp)
    x1f = to_flat(x1, Cp)

    def fold3x3(p):
        # (3,3,Cin,Cout) conv + BN -> packed (Cp, 9*Cp) [out, tap*in], bias (Cp,1)
        w = p["w"] * p["scale"][None, None, None, :]       # fold BN scale
        kh, kw_, cin, cout = w.shape
        t = jnp.transpose(w, (3, 0, 1, 2)).reshape(cout, kh * kw_, cin)
        t = jnp.pad(t, ((0, Cp - cout), (0, 0), (0, Cp - cin)))
        packed = t.reshape(Cp, kh * kw_ * Cp).astype(f32)
        bias = jnp.pad(p["bias"], (0, Cp - cout)).reshape(Cp, 1).astype(f32)
        return packed, bias

    def pack_branch(blocks):
        ws, bs = [], []
        for blk in blocks:
            for name in ("conv1", "conv2"):
                w, b = fold3x3(blk[name])
                ws.append(w)
                bs.append(b)
        return jnp.stack(ws, 0), jnp.stack(bs, 0)   # (2*nb, Cp, 9*Cp), (2*nb, Cp, 1)

    wb0, bb0 = pack_branch(params["branches"][0])
    wb1, bb1 = pack_branch(params["branches"][1])

    # fuse (0,1): 1x1 conv C1 -> C0 (+BN), then nearest 2x upsample (in-kernel).
    pu = params["fuse"][(0, 1)][0]
    wu = (pu["w"][0, 0] * pu["scale"][None, :]).T                   # (C0, C1)
    wu = jnp.pad(wu, ((0, Cp - C0), (0, Cp - C1))).astype(f32)
    bu = jnp.pad(pu["bias"], (0, Cp - C0)).reshape(Cp, 1).astype(f32)

    # fuse (1,0): 3x3 stride-2 conv C0 -> C1 (+BN).
    pd = params["fuse"][(1, 0)][0]
    wd, bd = fold3x3(pd)

    # Constant 0/1 matrices over the flattened pixel axes (used on the MXU):
    #   up_mat (M1, M0): nearest 2x upsample;  sub_mat (M0, M1): even-pixel pick.
    m0 = jnp.arange(M0)
    n_ = m0 // (H0 * W0)
    h_ = (m0 // W0) % H0
    w_ = m0 % W0
    lo_of_hi = n_ * (H1 * W1) + (h_ // 2) * W1 + (w_ // 2)
    up_mat = (jnp.arange(M1)[:, None] == lo_of_hi[None, :]).astype(f32)

    m1 = jnp.arange(M1)
    n1 = m1 // (H1 * W1)
    h1 = (m1 // W1) % H1
    w1 = m1 % W1
    hi_of_lo = n1 * (H0 * W0) + (2 * h1) * W0 + (2 * w1)
    sub_mat = (jnp.arange(M0)[:, None] == hi_of_lo[None, :]).astype(f32)

    # Per-tap validity masks (built here so the kernel does no iota/compares).
    def tap_masks(H, W, M):
        m = jnp.arange(M)
        hh = (m // W) % H
        ww = m % W
        rows = []
        for dh in (-1, 0, 1):
            for dw in (-1, 0, 1):
                rows.append((hh + dh >= 0) & (hh + dh < H)
                            & (ww + dw >= 0) & (ww + dw < W))
        return jnp.stack(rows, 0).astype(f32)        # (9, M)

    mask0 = tap_masks(H0, W0, M0)
    mask1 = tap_masks(H1, W1, M1)

    kernel = functools.partial(
        _hr_module_kernel, W0=W0, W1=W1, n_blocks=n_blocks,
        numpy_roll=_roll_is_numpy_like())

    per_pix_conv = 2 * Cp * 9 * Cp
    flops = (2 * n_blocks * per_pix_conv * (M0 + M1)     # branch convs
             + per_pix_conv * M0                          # fuse stride-2 conv
             + 2 * Cp * Cp * M1                           # fuse 1x1 conv
             + 2 * Cp * M1 * M0 + 2 * Cp * M0 * M1)       # upsample + pick
    bytes_accessed = 4 * int(
        x0f.size + x1f.size + wb0.size + bb0.size + wb1.size + bb1.size
        + wu.size + bu.size + wd.size + bd.size + up_mat.size + sub_mat.size
        + mask0.size + mask1.size + Cp * (M0 + M1))

    out0f, out1f = pl.pallas_call(
        kernel,
        out_shape=(jax.ShapeDtypeStruct((Cp, M0), f32),
                   jax.ShapeDtypeStruct((Cp, M1), f32)),
        cost_estimate=pl.CostEstimate(flops=int(flops), transcendentals=0,
                                      bytes_accessed=bytes_accessed),
    )(x0f, x1f, wb0, bb0, wb1, bb1, wu, bu, wd, bd, up_mat, sub_mat,
      mask0, mask1)

    def from_flat(f, c, H, W):
        return jnp.transpose(f[:c].reshape(c, N, H, W), (1, 2, 3, 0))

    return [from_flat(out0f, C0, H0, W0), from_flat(out1f, C1, H1, W1)]


# ----------------------------------------------------------------------------
# Parameters (deterministic synthetic init, BN folded to scale/bias)
# ----------------------------------------------------------------------------
def _fold_bn(gamma, beta, mean, var, eps=1e-5):
    scale = gamma / jnp.sqrt(var + eps)
    return scale, beta - mean * scale


def _init_conv_bn(key, kh, kw, cin, cout):
    kw_, kg, kb, km, kv = jax.random.split(key, 5)
    w = jax.random.normal(kw_, (kh, kw, cin, cout), jnp.float32) * 0.1
    gamma = jax.random.uniform(kg, (cout,), jnp.float32, 0.5, 1.5)
    beta = jax.random.normal(kb, (cout,), jnp.float32) * 0.1
    mean = jax.random.normal(km, (cout,), jnp.float32) * 0.1
    var = jax.random.uniform(kv, (cout,), jnp.float32, 0.5, 1.5)
    scale, bias = _fold_bn(gamma, beta, mean, var)
    return {"w": w, "scale": scale, "bias": bias}


def init_module_params(key, num_branches, num_blocks, num_inchannels):
    keys = jax.random.split(key, 128)
    ki = 0
    params = {"branches": [], "fuse": {}}
    for b in range(num_branches):
        c = num_inchannels[b]
        blocks = []
        for _ in range(num_blocks[b]):
            blocks.append({
                "conv1": _init_conv_bn(keys[ki], 3, 3, c, c),
                "conv2": _init_conv_bn(keys[ki + 1], 3, 3, c, c),
            })
            ki += 2
        params["branches"].append(blocks)
    for i in range(num_branches):
        for j in range(num_branches):
            if j > i:
                params["fuse"][(i, j)] = [
                    _init_conv_bn(keys[ki], 1, 1, num_inchannels[j], num_inchannels[i])]
                ki += 1
            elif j < i:
                convs = []
                for k in range(i - j):
                    cout = num_inchannels[i] if k == i - j - 1 else num_inchannels[j]
                    convs.append(_init_conv_bn(keys[ki], 3, 3, num_inchannels[j], cout))
                    ki += 1
                params["fuse"][(i, j)] = convs
    return params


# ----------------------------------------------------------------------------
# Pure-JAX reference (for correctness check) — full f32 precision
# ----------------------------------------------------------------------------
def upsample_nearest(x, factor):
    return jnp.repeat(jnp.repeat(x, factor, axis=1), factor, axis=2)


def _ref_conv_bn(x, w, scale, bias, stride=1, relu=False, residual=None):
    ph, pw = w.shape[0] // 2, w.shape[1] // 2
    y = jax.lax.conv_general_dilated(
        x, w, window_strides=(stride, stride),
        padding=[(ph, ph), (pw, pw)],
        dimension_numbers=("NHWC", "HWIO", "NHWC"),
        precision=jax.lax.Precision.HIGHEST)
    y = y * scale + bias
    if residual is not None:
        y = y + residual
    if relu:
        y = jnp.maximum(y, 0.0)
    return y


def _ref_forward(xs, params, num_branches, multi_scale_output=True):
    xs = list(xs)
    for b in range(num_branches):
        for blk in params["branches"][b]:
            out = _ref_conv_bn(xs[b], blk["conv1"]["w"], blk["conv1"]["scale"],
                               blk["conv1"]["bias"], relu=True)
            xs[b] = _ref_conv_bn(out, blk["conv2"]["w"], blk["conv2"]["scale"],
                                 blk["conv2"]["bias"], relu=True, residual=xs[b])
    outs = []
    n_out = num_branches if multi_scale_output else 1
    for i in range(n_out):
        acc = None
        for j in range(num_branches):
            if j == i:
                t = xs[j]
            elif j > i:
                p = params["fuse"][(i, j)][0]
                t = _ref_conv_bn(xs[j], p["w"], p["scale"], p["bias"])
                t = upsample_nearest(t, 2 ** (j - i))
            else:
                t = xs[j]
                convs = params["fuse"][(i, j)]
                for k, p in enumerate(convs):
                    t = _ref_conv_bn(t, p["w"], p["scale"], p["bias"], stride=2,
                                     relu=(k != len(convs) - 1))
            acc = t if acc is None else acc + t
        outs.append(jnp.maximum(acc, 0.0))
    return outs


# ----------------------------------------------------------------------------
if __name__ == "__main__":
    key = jax.random.PRNGKey(0)
    k0, k1, kp = jax.random.split(key, 3)

    num_branches = 2
    num_blocks = [2, 2]
    num_inchannels = [4, 8]

    # PyTorch-style NCHW inputs (branch 1 at half resolution).
    x0_nchw = jax.random.normal(k0, (2, 4, 16, 16), jnp.float32)
    x1_nchw = jax.random.normal(k1, (2, 8, 8, 8), jnp.float32)
    xs = [jnp.transpose(x0_nchw, (0, 2, 3, 1)),
          jnp.transpose(x1_nchw, (0, 2, 3, 1))]  # -> NHWC

    params = init_module_params(kp, num_branches, num_blocks, num_inchannels)

    # Pin down the pltpu.roll direction once before tracing the fused kernel.
    _roll_is_numpy_like()

    forward = jax.jit(functools.partial(hr_module_forward,
                                        num_branches=num_branches,
                                        multi_scale_output=True))
    outs = forward(xs, params)
    outs = [jax.block_until_ready(o) for o in outs]

    refs = _ref_forward(xs, params, num_branches, multi_scale_output=True)
    for o, r in zip(outs, refs):
        err = float(jnp.max(jnp.abs(o - r)))
        # Tolerance covers any MXU multi-pass rounding differences vs the XLA
        # HIGHEST-precision conv reference; real structural bugs are O(0.1+).
        assert jnp.allclose(o, r, atol=1e-2, rtol=1e-2), f"max abs err {err}"

    # Convert back to NCHW to mirror the PyTorch module's output convention.
    outs_nchw = [jnp.transpose(o, (0, 3, 1, 2)) for o in outs]
    assert outs_nchw[0].shape == (2, 4, 16, 16) and outs_nchw[1].shape == (2, 8, 8, 8)

    print("KERNEL_OK")
</pallas_src>

<mosaic_0001>
module attributes {stable_mosaic.version = 11 : i64} {
  func.func @probe(%arg0: memref<8x128xf32, #tpu.memory_space<vmem>>, %arg1: memref<8x128xf32, #tpu.memory_space<vmem>>) attributes {dimension_semantics = [], scalar_prefetch = 0 : i64, scratch_operands = 0 : i64, tpu.core_type = #tpu.core_type<tc>} {
    %c0 = arith.constant 0 : index
    %c0_0 = arith.constant 0 : index
    %0 = vector.load %arg0[%c0, %c0_0] : memref<8x128xf32, #tpu.memory_space<vmem>>, vector<8x128xf32>
    %c1_i32 = arith.constant 1 : i32
    %1 = tpu.dynamic_rotate %0 by %c1_i32 dim 1 : vector<8x128xf32>, i32 -> vector<8x128xf32>
    %c0_1 = arith.constant 0 : index
    %c0_2 = arith.constant 0 : index
    %2 = vector.load %arg1[%c0_1, %c0_2] : memref<8x128xf32, #tpu.memory_space<vmem>>, vector<8x128xf32>
    tpu.vector_store %arg1[%c0_1, %c0_2], %1 {strides = array<i32>} : memref<8x128xf32, #tpu.memory_space<vmem>>, vector<8x128xf32>,
    return
  }
}

</mosaic_0001>

<bundles_post_ra>
// kernel: tpu_custom_call.1
= control target key start
LH: loop header
LB: loop body
LE: loop exit
PB: predicated region body
PF: predicated region fallthrough
CT: control target
= control target key end

     0   :  { %6 = vsyncpa [#allocation3], 0  ;;  %s128_s0 = inlined_call_operand.hbm [shape: f32[8,128], index: 0, kind: input, shape index: {}]   ;;  %s129_s1 = inlined_call_operand.hbm [shape: f32[8,128], index: 1, kind: output, shape index: {}]  }
   0x1   :  { %7 = vsyncpa [#allocation4], 0  ;;  %s91_s6 = smov [#allocation2]   ;;  %s43_s10 = scalar_lea.hbm %s128_s0, 128 }
   0x2   :  { %s14_s7 = sshll.u32 %s91_s6, 4  ;;  %p44_p0 = scmp.ne.s32.totalorder %s128_s0, %s43_s10  ;;  %s15_s7 = int_to_ptr.vmem [resolvable:$true] %s14_s7 }
   0x3   :  { %p47_p1 = scmp.lt.u32.totalorder %s43_s10, %s128_s0 }
   0x5   :  { %p49_p2 = pnand %p47_p1, %p44_p0 }
   0x7   :  { %52 = shalt.err (!%p49_p2)
}
   0x8   :  { %s53_s15 = scalar_lea.vmem %s15_s7, 128  ;;  %p58_p4 = scmp.lt.s32.totalorder %s15_s7, %s15_s7 }
   0x9   :  { %p54_p3 = scmp.ne.s32.totalorder %s15_s7, %s53_s15  ;;  %p59_p5 = scmp.lt.s32.totalorder %s53_s15, %s53_s15 }
   0xb   :  { %p60_p6 = por %p59_p5, %p58_p4 }
   0xd   :  { %p61_p7 = pnand %p60_p6, %p54_p3 }
   0xf   :  { %64 = shalt.err (!%p61_p7)
}
  0x10   :  { %17 = dma.hbm_to_vmem [thread:$0]  %s128_s0, 128, %s15_s7, [#allocation3]  }
  0x11   :  { %87 = dma.done.wait [#allocation3], 128  }
  0x12   :  { %88 = vsyncadd [#allocation3], 4294967168  ;;  %v21_v0 = vld [vmem:[#allocation2] sm:$0xff]  ;;  %s92_s18 = smov 1   ;;  %s93_s19 = smov [#allocation5]  }
  0x13   :  { %22 = vrot.lane.b32.xlu0 %v21_v0, %s92_s18  ;;  %s31_s20 = sshll.u32 %s93_s19, 4  ;;  %s32_s20 = int_to_ptr.vmem [resolvable:$true] %s31_s20 }
  0x14   :  { %s65_s21 = scalar_lea.vmem %s32_s20, 128  ;;  %p70_p9 = scmp.lt.s32.totalorder %s32_s20, %s32_s20 }
  0x15   :  { %p66_p8 = scmp.ne.s32.totalorder %s32_s20, %s65_s21  ;;  %p71_p10 = scmp.lt.s32.totalorder %s65_s21, %s65_s21 }
  0x17   :  { %p72_p11 = por %p71_p10, %p70_p9 }
  0x19   :  { %p73_p12 = pnand %p72_p11, %p66_p8 }
  0x85   :  { %v23_v1 = vpop.permute.xlu0 %22 }
  0x86   :  { %24 = vst [vmem:[#allocation5] sm:$0xff] %v23_v1 }
  0x87   :  { %76 = shalt.err (!%p73_p12)
}
  0x88   :  { %s77_s0 = scalar_lea.hbm %s129_s1, 128 }
  0x89   :  { %p78_p13 = scmp.ne.s32.totalorder %s129_s1, %s77_s0  ;;  %p81_p0 = scmp.lt.u32.totalorder %s77_s0, %s129_s1 }
  0x8b   :  { %p83_p1 = pnand %p81_p0, %p78_p13 }
  0x8d   :  { %86 = shalt.err (!%p83_p1)
}
  0x8e   :  { %34 = dma.vmem_to_hbm [thread:$0]  %s32_s20, 128, %s129_s1, [#allocation4]  }
  0x8f   :  { %89 = dma.done.wait [#allocation4], 128  }
  0x90   :  { %90 = vsyncadd [#allocation4], 4294967168 }
  0x91   :  { %38 = vsyncpa [#allocation3], 1 }
  0x92   :  { %39 = vsyncpa [#allocation4], 1 }

</bundles_post_ra>
